<compile_context>
chip_gen: v7x
topology: tpu7x:2x2x1
jax: 0.10.0
libtpu: 0.0.40
codegen_flags: <defaults>
</compile_context>

<pallas_src>
import math

import jax
import jax.numpy as jnp
from jax.experimental import pallas as pl
from jax.experimental.pallas import tpu as pltpu


def _round_up(x, m):
    return (x + m - 1) // m * m


def _tile_and_pad(dim, max_tile):
    """Pick a lane-dense tile <= max_tile and the padded dim it divides."""
    d = _round_up(dim, 128)
    if d <= max_tile:
        return d, d
    n = -(-d // max_tile)
    tile = _round_up(-(-d // n), 128)
    return tile, tile * n


def _device_defaults():
    """Derive VMEM limit and default row_tile from the local TPU generation."""
    try:
        vmem_bytes = int(pltpu.get_tpu_info().vmem_capacity_bytes)
    except Exception:  # query unavailable -> universally safe fallback
        vmem_bytes = 64 * 1024 * 1024
    vmem_limit = int(vmem_bytes * 0.75)  # headroom for internal scratch / sems
    # Rows needed to hide a per-tile weight fetch (peak bf16 flops / HBM BW):
    # ~240 (v5e), ~650 (v6e), ~310 (v7x).  128-MiB-VMEM chips afford 512.
    row_tile = 384 if vmem_bytes <= 64 * 1024 * 1024 else 512
    return vmem_limit, row_tile


def _hetero_linear_kernel(tile_type_ref, x_ref, w_ref, b_ref, o_ref, acc_ref):
    i = pl.program_id(0)          # row tile
    j = pl.program_id(1)          # out tile
    k = pl.program_id(2)          # k tile (reduction, "arbitrary")
    n_out = pl.num_programs(1)
    t = tile_type_ref[i]          # SMEM scalar: type id of this row tile

    @pl.when(k == 0)
    def _():
        # Bias is fully VMEM-resident: row (t * n_out + j) is the j-th out-tile
        # of type t.  Fold it into the accumulator init.
        b = b_ref[t * n_out + j]                              # (1, tn) f32
        acc_ref[...] = jnp.broadcast_to(b, acc_ref.shape)

    acc_ref[...] += jnp.dot(x_ref[...], w_ref[...],
                            preferred_element_type=jnp.float32)

    @pl.when(k == pl.num_programs(2) - 1)
    def _():
        o_ref[...] = acc_ref[...].astype(o_ref.dtype)


def prepare_hetero_linear_params(weight_t, bias, *, tk_max=512, tn_max=512):
    """Pad + cast the per-type parameter tables ONCE (hoisted out of forward).

    weight_t: [T, F_in, F_out] (transposed torch weight); bias: [T, F_out].
    """
    T, F_in, F_out = weight_t.shape
    tk, f_in_p = _tile_and_pad(F_in, tk_max)
    tn, f_out_p = _tile_and_pad(F_out, tn_max)
    n_k = f_in_p // tk
    n_out = f_out_p // tn

    w_pad = jnp.pad(weight_t.astype(jnp.bfloat16),
                    ((0, 0), (0, f_in_p - F_in), (0, f_out_p - F_out)))
    b_pad = jnp.pad(bias.reshape(T, F_out).astype(jnp.float32),
                    ((0, 0), (0, f_out_p - F_out)))
    # Layout for in-kernel residency: row (t * n_out + j) = out-tile j of type t.
    b_res = b_pad.reshape(T, n_out, tn).reshape(T * n_out, 1, tn)

    return dict(w_pad=w_pad, b_res=b_res, num_types=T,
                in_channels=F_in, out_channels=F_out,
                f_in_p=f_in_p, f_out_p=f_out_p,
                tk=tk, tn=tn, n_k_tiles=n_k, n_out_tiles=n_out)


def hetero_linear(x, type_vec, params, *, row_tile=None, vmem_limit_bytes=None):
    """Grouped-matmul HeteroLinear forward.

    x:        [N, F_in] float
    type_vec: [N] int (values in [0, num_types))
    params:   output of prepare_hetero_linear_params (padded bf16 weights etc.)
    returns:  [N, F_out] in x.dtype
    """
    N, F_in = x.shape
    assert F_in == params["in_channels"]
    T = params["num_types"]
    F_out = params["out_channels"]
    f_in_p = params["f_in_p"]
    f_out_p = params["f_out_p"]
    tk, tn = params["tk"], params["tn"]
    n_k, n_out = params["n_k_tiles"], params["n_out_tiles"]
    w_pad, b_res = params["w_pad"], params["b_res"]

    auto_limit, auto_row_tile = _device_defaults()
    if vmem_limit_bytes is None:
        vmem_limit_bytes = auto_limit
    if row_tile is None:
        row_tile = auto_row_tile
    assert row_tile % 8 == 0, "row_tile must be a multiple of 8 (sublane)"

    # Out-of-range types are clamped (PyTorch would leave those rows
    # uninitialized via new_empty).
    tv = jnp.clip(type_vec.astype(jnp.int32), 0, T - 1)

    # ---- Route rows: sort by type, pad each group to a multiple of row_tile.
    counts = jnp.bincount(tv, length=T).astype(jnp.int32)                 # [T]
    padded_counts = ((counts + row_tile - 1) // row_tile) * row_tile      # [T]
    zeros1 = jnp.zeros((1,), jnp.int32)
    sorted_starts = jnp.concatenate(
        [zeros1, jnp.cumsum(counts)[:-1].astype(jnp.int32)])
    padded_starts = jnp.concatenate(
        [zeros1, jnp.cumsum(padded_counts)[:-1].astype(jnp.int32)])
    padded_ends = jnp.cumsum(padded_counts).astype(jnp.int32)
    total = padded_ends[-1]                                               # dyn

    sort_idx = jnp.argsort(tv)
    sorted_types = tv[sort_idx]
    rank_in_group = jnp.arange(N, dtype=jnp.int32) - sorted_starts[sorted_types]
    padded_pos = padded_starts[sorted_types] + rank_in_group              # [N]

    num_tiles = -(-N // row_tile) + T          # static upper bound on row tiles
    n_pad = num_tiles * row_tile

    # ---- Gather formulation (no scatters): padded_row -> source row + mask.
    p = jnp.arange(n_pad, dtype=jnp.int32)
    g = jnp.minimum(jnp.searchsorted(padded_ends, p, side="right"),
                    T - 1).astype(jnp.int32)
    r = p - padded_starts[g]
    valid = (p < total) & (r < counts[g])
    src_sorted = jnp.clip(sorted_starts[g] + r, 0, N - 1)
    src_row = sort_idx[src_sorted]                                        # [n_pad]
    x_rows = jnp.where(valid[:, None], x[src_row].astype(jnp.bfloat16), 0)
    x_pad = jnp.pad(x_rows, ((0, 0), (0, f_in_p - F_in)))                 # lane-dense

    # ---- Per-tile type id (scalar prefetch -> data-dependent weight index_map).
    tile_start = jnp.arange(num_tiles, dtype=jnp.int32) * row_tile
    raw_tt = jnp.minimum(
        jnp.searchsorted(padded_ends, tile_start, side="right"), T - 1
    ).astype(jnp.int32)
    # Tail tiles (static over-allocation) reuse the last real tile's type so the
    # weight block index repeats and Pallas skips the re-fetch.
    last_real = jnp.maximum(total // row_tile - 1, 0)
    tile_type = jnp.where(tile_start < total, raw_tt,
                          raw_tt[last_real]).astype(jnp.int32)

    out_pad = pl.pallas_call(
        _hetero_linear_kernel,
        out_shape=jax.ShapeDtypeStruct((n_pad, f_out_p), x.dtype),
        grid_spec=pltpu.PrefetchScalarGridSpec(
            num_scalar_prefetch=1,
            grid=(num_tiles, n_out, n_k),
            in_specs=[
                # x row tile for this (row, k) grid step.
                pl.BlockSpec((row_tile, tk), lambda i, j, k, tt: (i, k)),
                # Per-type weight (tk, tn) block, selected by prefetched type.
                pl.BlockSpec((None, tk, tn), lambda i, j, k, tt: (tt[i], k, j)),
                # Bias: full table, constant index -> DMA'd once, VMEM-resident.
                pl.BlockSpec((T * n_out, 1, tn), lambda i, j, k, tt: (0, 0, 0)),
            ],
            out_specs=pl.BlockSpec((row_tile, tn), lambda i, j, k, tt: (i, j)),
            scratch_shapes=[pltpu.VMEM((row_tile, tn), jnp.float32)],
        ),
        compiler_params=pltpu.CompilerParams(
            dimension_semantics=("parallel", "parallel", "arbitrary"),
            vmem_limit_bytes=vmem_limit_bytes,
        ),
    )(tile_type, x_pad, w_pad, b_res)

    # Undo sort/padding with a gather: original row r lives at padded row
    # padded_pos[argsort(sort_idx)[r]].
    inv_sort = jnp.argsort(sort_idx)
    gather_idx = padded_pos[inv_sort]
    return out_pad[gather_idx, :F_out]


def init_params(key, num_types, in_channels, out_channels):
    """Deterministic init matching the module defaults:
    weight: kaiming_uniform(fan=in_channels, a=sqrt(5)) -> U(-bound, bound)
            with bound = sqrt(6 / ((1 + a^2) * fan))
    bias:   uniform(in_channels, bias) -> U(-1/sqrt(in), 1/sqrt(in))."""
    kw, kb = jax.random.split(key)
    a = math.sqrt(5.0)
    w_bound = math.sqrt(6.0 / ((1.0 + a * a) * in_channels))
    # Torch stores weight as [out, in]; we keep the transposed [in, out] layout.
    weight_t = jax.random.uniform(
        kw, (num_types, in_channels, out_channels),
        minval=-w_bound, maxval=w_bound, dtype=jnp.float32)
    b_bound = 1.0 / math.sqrt(in_channels)
    bias = jax.random.uniform(
        kb, (num_types, out_channels),
        minval=-b_bound, maxval=b_bound, dtype=jnp.float32)
    return weight_t, bias


if __name__ == "__main__":
    key = jax.random.PRNGKey(0)
    k_x, k_t, k_p = jax.random.split(key, 3)

    N, F_in, F_out, T = 64, 32, 64, 3

    x = jax.random.normal(k_x, (N, F_in), dtype=jnp.float32)
    type_vec = jax.random.randint(k_t, (N,), 0, T, dtype=jnp.int32)
    weight_t, bias = init_params(k_p, T, F_in, F_out)

    # Parameter padding / bf16 cast happens once, outside the forward path.
    params = prepare_hetero_linear_params(weight_t, bias)

    out = hetero_linear(x, type_vec, params, row_tile=128)
    out = jax.block_until_ready(out)

    # Pure-JAX reference (f32); kernel matmul is bf16 -> loose tolerance.
    ref = jnp.einsum("nf,nfo->no", x, weight_t[type_vec]) + bias[type_vec]
    assert out.shape == (N, F_out)
    assert out.dtype == x.dtype
    max_err = float(jnp.max(jnp.abs(out - ref)))
    assert jnp.allclose(out, ref, atol=3e-2, rtol=3e-2), (
        f"mismatch vs reference (max abs err {max_err})")

    print("KERNEL_OK")
</pallas_src>

<mosaic_0001>
module attributes {stable_mosaic.version = 11 : i64} {
  func.func @_hetero_linear_kernel(%arg0: i32, %arg1: i32, %arg2: i32, %arg3: memref<4xi32, #tpu.memory_space<smem>>, %arg4: memref<128x128xbf16, #tpu.memory_space<vmem>>, %arg5: memref<1x128x128xbf16, #tpu.memory_space<vmem>>, %arg6: memref<3x1x128xf32, #tpu.memory_space<vmem>>, %arg7: memref<128x128xf32, #tpu.memory_space<vmem>>, %arg8: memref<128x128xf32, #tpu.memory_space<vmem>>) attributes {dimension_semantics = [#tpu.dimension_semantics<parallel>, #tpu.dimension_semantics<parallel>, #tpu.dimension_semantics<arbitrary>], iteration_bounds = array<i64: 4, 1, 1>, scalar_prefetch = 1 : i64, scratch_operands = 1 : i64, tpu.core_type = #tpu.core_type<tc>, window_params = [{transform_indices = @transform_0, window_bounds = array<i64: 128, 128>}, {transform_indices = @transform_1, window_bounds = array<i64: 1, 128, 128>}, {pipeline_mode = #tpu.pipeline_mode<synchronous>, transform_indices = @transform_2, window_bounds = array<i64: 3, 1, 128>}, {transform_indices = @transform_3, window_bounds = array<i64: 128, 128>}]} {
    %0 = arith.index_cast %arg0 : i32 to index
    %1 = memref.load %arg3[%0] : memref<4xi32, #tpu.memory_space<smem>>
    %c0_i32 = arith.constant 0 : i32
    %2 = arith.cmpi eq, %arg2, %c0_i32 : i32
    %3 = arith.extui %2 : i1 to i32
    %c0_i32_0 = arith.constant 0 : i32
    %4 = arith.cmpi ne, %3, %c0_i32_0 : i32
    scf.if %4 {
      %c1_i32 = arith.constant 1 : i32
      %15 = arith.muli %1, %c1_i32 : i32
      %16 = arith.addi %15, %arg1 : i32
      %17 = arith.index_cast %16 : i32 to index
      %c0_11 = arith.constant 0 : index
      %c0_12 = arith.constant 0 : index
      %18 = vector.load %arg6[%17, %c0_11, %c0_12] : memref<3x1x128xf32, #tpu.memory_space<vmem>>, vector<1x1x128xf32>
      %19 = vector.shape_cast %18 : vector<1x1x128xf32> to vector<1x128xf32>
      %20 = vector.shape_cast %19 : vector<1x128xf32> to vector<1x128xf32>
      %21 = vector.broadcast %20 : vector<1x128xf32> to vector<128x128xf32>
      %c0_13 = arith.constant 0 : index
      %c0_14 = arith.constant 0 : index
      %22 = vector.load %arg8[%c0_13, %c0_14] : memref<128x128xf32, #tpu.memory_space<vmem>>, vector<128x128xf32>
      tpu.vector_store %arg8[%c0_13, %c0_14], %21 {strides = array<i32>} : memref<128x128xf32, #tpu.memory_space<vmem>>, vector<128x128xf32>,
    } else {
    }
    %c0 = arith.constant 0 : index
    %c0_1 = arith.constant 0 : index
    %5 = vector.load %arg8[%c0, %c0_1] : memref<128x128xf32, #tpu.memory_space<vmem>>, vector<128x128xf32>
    %c0_2 = arith.constant 0 : index
    %c0_3 = arith.constant 0 : index
    %6 = vector.load %arg4[%c0_2, %c0_3] : memref<128x128xbf16, #tpu.memory_space<vmem>>, vector<128x128xbf16>
    %c0_4 = arith.constant 0 : index
    %c0_5 = arith.constant 0 : index
    %c0_6 = arith.constant 0 : index
    %7 = vector.load %arg5[%c0_4, %c0_5, %c0_6] : memref<1x128x128xbf16, #tpu.memory_space<vmem>>, vector<1x128x128xbf16>
    %8 = vector.shape_cast %7 : vector<1x128x128xbf16> to vector<128x128xbf16>
    %cst = arith.constant dense<0.000000e+00> : vector<128x128xf32>
    %9 = tpu.matmul %6, %8, %cst {dimension_numbers = #tpu.dot_dimension_numbers<[1], [0], [0], [1], [0, 0, 1, 1], [], []>} : vector<128x128xbf16>, vector<128x128xbf16>, vector<128x128xf32> -> vector<128x128xf32>
    %10 = arith.addf %5, %9 : vector<128x128xf32>
    %c0_7 = arith.constant 0 : index
    %c0_8 = arith.constant 0 : index
    %11 = vector.load %arg8[%c0_7, %c0_8] : memref<128x128xf32, #tpu.memory_space<vmem>>, vector<128x128xf32>
    tpu.vector_store %arg8[%c0_7, %c0_8], %10 {strides = array<i32>} : memref<128x128xf32, #tpu.memory_space<vmem>>, vector<128x128xf32>,
    %c0_i32_9 = arith.constant 0 : i32
    %12 = arith.cmpi eq, %arg2, %c0_i32_9 : i32
    %13 = arith.extui %12 : i1 to i32
    %c0_i32_10 = arith.constant 0 : i32
    %14 = arith.cmpi ne, %13, %c0_i32_10 : i32
    scf.if %14 {
      %c0_11 = arith.constant 0 : index
      %c0_12 = arith.constant 0 : index
      %15 = vector.load %arg8[%c0_11, %c0_12] : memref<128x128xf32, #tpu.memory_space<vmem>>, vector<128x128xf32>
      %c0_13 = arith.constant 0 : index
      %c0_14 = arith.constant 0 : index
      %16 = vector.load %arg7[%c0_13, %c0_14] : memref<128x128xf32, #tpu.memory_space<vmem>>, vector<128x128xf32>
      tpu.vector_store %arg7[%c0_13, %c0_14], %15 {strides = array<i32>} : memref<128x128xf32, #tpu.memory_space<vmem>>, vector<128x128xf32>,
    } else {
    }
    return
  }
  func.func @transform_0(%arg0: i32, %arg1: i32, %arg2: i32, %arg3: memref<4xi32, #tpu.memory_space<smem>>) -> (i32, i32) {
    %c0_i32 = arith.constant 0 : i32
    return %arg0, %arg2 : i32, i32
  }
  func.func @transform_1(%arg0: i32, %arg1: i32, %arg2: i32, %arg3: memref<4xi32, #tpu.memory_space<smem>>) -> (i32, i32, i32) {
    %0 = arith.index_cast %arg0 : i32 to index
    %1 = memref.load %arg3[%0] : memref<4xi32, #tpu.memory_space<smem>>
    %c0_i32 = arith.constant 0 : i32
    return %1, %arg2, %arg1 : i32, i32, i32
  }
  func.func @transform_2(%arg0: i32, %arg1: i32, %arg2: i32, %arg3: memref<4xi32, #tpu.memory_space<smem>>) -> (i32, i32, i32) {
    %c0_i32 = arith.constant 0 : i32
    %c0_i32_0 = arith.constant 0 : i32
    %c0_i32_1 = arith.constant 0 : i32
    %c0_i32_2 = arith.constant 0 : i32
    return %c0_i32, %c0_i32_0, %c0_i32_1 : i32, i32, i32
  }
  func.func @transform_3(%arg0: i32, %arg1: i32, %arg2: i32, %arg3: memref<4xi32, #tpu.memory_space<smem>>) -> (i32, i32) {
    %c0_i32 = arith.constant 0 : i32
    return %arg0, %arg1 : i32, i32
  }
}

</mosaic_0001>

<bundles_post_ra>
// kernel: tpu_custom_call.1
= control target key start
LH: loop header
LB: loop body
LE: loop exit
PB: predicated region body
PF: predicated region fallthrough
CT: control target
= control target key end

     0   :  { %s1542_s0 = inlined_call_operand.hbm [shape: s32[4], index: 0, kind: input, shape index: {}]   ;;  %s1543_s1 = inlined_call_operand.hbm [shape: bf16[512,128], index: 1, kind: input, shape index: {}]   ;;  %s1544_s2 = inlined_call_operand.hbm [shape: bf16[3,128,128], index: 2, kind: input, shape index: {}]   ;;  %s1545_s3 = inlined_call_operand.vmem [shape: f32[3,1,128], index: 3, kind: input, shape index: {}]   ;;  %s1546_s4 = inlined_call_operand.hbm [shape: f32[512,128], index: 4, kind: output, shape index: {}]  }
   0x1   :  { %1556 = sst [smem:[#allocation19_spill]] %s1543_s1  ;;  %s962_s17 = scalar_lea.hbm %s1542_s0, 16 }
   0x2   :  { %p963_p0 = scmp.ne.s32.totalorder %s1542_s0, %s962_s17  ;;  %p966_p1 = scmp.lt.u32.totalorder %s962_s17, %s1542_s0 }
   0x4   :  { %p968_p2 = pnand %p966_p1, %p963_p0 }
   0x6   :  { %971 = shalt.err (!%p968_p2)  }
   0x7   :  { %s1146_s22 = smov [#allocation4]  }
   0x8   :  { %10 = dma.hbm_to_smem %s1542_s0, 16, %s1146_s22, [#allocation3] }
   0x9   :  { %1096 = dma.done.wait [#allocation3], 16 }
   0xa   :  { %1097 = vsyncadd [#allocation3], 4294967280 }
   0xb   :  { %12 = sfence }
   0xc   :  { %13 = vsyncpa [#allocation6], 0 }
   0xd   :  { %15 = vsyncpa [#allocation6 + $0x1], 0 }
   0xe   :  { %16 = vsyncpa [#allocation9], 0 }
   0xf   :  { %18 = vsyncpa [#allocation9 + $0x1], 0 }
  0x10   :  { %19 = vsyncpa [#allocation7], 0 }
  0x11   :  { %21 = vsyncpa [#allocation7 + $0x1], 0  ;;  %s1191_s25 = smov 0   ;;  %s1193_s26 = smov 0  }
  0x12   :  { %s1195_s27 = smov 0   ;;  %s1197_s28 = smov 0  }
  0x13   :  { %s1199_s29 = smov 0   ;;  %s1201_s0 = smov 0  }
  0x14   :  { %s1203_s30 = smov 0   ;;  %s1205_s5 = smov 0  }
  0x15   :  { %s1207_s6 = smov 0  }
  0x16 LB: > { %1557 = sst [smem:[#allocation17_spill]] %s1140_s5  ;;  %s743_s7 = sadd.s32 4294967295, %s1144_s6   ;;  %s1144_s6 = sphi %s1207_s6, %s27_s6   ;;  %s1140_s5 = sphi %s1205_s5, %s1581_s5   ;;  %s1136_s30 = sphi %s1203_s30, %s1580_s30   ;;  %s1132_s0 = sphi %s1201_s0, %s1587_s0   ;;  %s1128_s29 = sphi %s1199_s29, %s1586_s29   ;;  %s1124_s28 = sphi %s1197_s28, %s1585_s28   ;;  %s1120_s27 = sphi %s1195_s27, %s1584_s27   ;;  %s1116_s26 = sphi %s1193_s26, %s1583_s26   ;;  %s1112_s25 = sphi %s1191_s25, %s1582_s25  }
  0x17   : > { %s744_s8 = sadd.s32 4294967294, %s1144_s6   ;;  %s46_s9 = sadd.s32 1, %s1140_s5 }
  0x18   : > { %s55_s10 = sadd.s32 1, %s1132_s0  ;;  %p48_p3 = scmp.ge.s32.totalorder %s46_s9, 4 }
  0x19   : > { %p62_p4 = scmp.ne.s32.totalorder %s1132_s0, %s1128_s29  ;;  %p1549_p5 = scmp.eq.s32.totalorder %s1144_s6, 0 }
  0x1a   : > { %p68_p6 = scmp.ne.s32.totalorder %s1128_s29, %s1124_s28  ;;  %s1589_s9 = smov (%p48_p3, %s46_s9), 0 }
  0x1b   : > { %1558 = sst [smem:[#allocation18_spill]] %s1589_s9  ;;  %p1252_p7 = por %p1549_p5, %p62_p4 }
  0x1c   : > { %p1256_p8 = scmp.eq.s32.totalorder %s743_s7, 0  ;;  %s50_s13 = ssub.s32 %s1140_s5, %s1589_s9 }
  0x1d   : > { %s1263_s14 = sld [smem:[#allocation4 + %s1140_s5]]  ;;  %p53_p9 = scmp.eq.s32.totalorder %s50_s13, 0 }
  0x1e   : > { %p1270_p10 = por %p1256_p8, %p68_p6  ;;  %s1275_s16 = sld [smem:[#allocation4 + %s1589_s9]] }
  0x1f   : > { %p147_p11 = scmp.eq.s32.totalorder %s743_s7, 3  ;;  %p153_p13 = scmp.eq.s32.totalorder %s744_s8, 3 }
  0x20   : > { %s1561_s15 = scalar_select %p1270_p10, 1, 0 }
  0x21   : > { %s1278_s17 = scalar_select %p53_p9, %s1132_s0, %s55_s10  }
  0x22   : > { %p1283_p12 = por %p147_p11, %p62_p4  ;;  %p1548_p0 = scmp.lt.s32.totalorder %s1144_s6, 4 }
  0x23   : > { %p1291_p1 = por %p153_p13, %p68_p6  ;;  %s176_s20 = sand.u32 1, %s1132_s0  }
  0x24   : > { %s1562_s18 = scalar_select %p1283_p12, 1, 0 }
  0x25   : > { %s1563_s19 = scalar_select %p1291_p1, 1, 0 }
  0x26   : > { %s747_s21 = sshll.u32 %s176_s20, 6  ;;  %s779_s22 = sshll.u32 %s1140_s5, 10 }
  0x27   : > { %s1564_s1 = sld [smem:[#allocation19_spill]]  ;;  %s180_s10 = scalar_lea.vmem [#allocation5], %s747_s21 }
  0x28   : > { %s188_s8 = sshll.u32 %s180_s10, 4  ;;  %p1308_p2 = pnand %p1548_p0, %p1252_p7  ;;  %s1302_s8 = int_to_ptr.vmem [resolvable:$true] %s188_s8 }
  0x29   : > { %s1313_s23 = scalar_lea.sflag [#allocation6], %s176_s20 }
  0x2a   : > { %p974_p6 = pneg %p1308_p2 }
  0x2d   : > { %s1300_s7 = scalar_lea.hbm %s1564_s1, %s779_s22  ;;  %s977_s24 = scalar_lea.hbm %s1564_s1, 4096 }
  0x2e   : > { %s972_s22 = scalar_lea.hbm %s1300_s7, 1024  ;;  %p978_p7 = scmp.lt.u32.totalorder %s1300_s7, %s1564_s1 }
  0x2f   : > { %p973_p4 = scmp.ne.s32.totalorder %s1300_s7, %s972_s22  ;;  %p979_p13 = scmp.lt.u32.totalorder %s977_s24, %s972_s22 }
  0x30   : > { %p981_p5 = scmp.lt.u32.totalorder %s972_s22, %s1300_s7 }
  0x31   : > { %p975_p9 = pnand %p974_p6, %p973_p4  ;;  %p980_p0 = por %p979_p13, %p978_p7 }
  0x33   : > { %p976_p11 = pneg %p975_p9  ;;  %p982_p3 = por %p981_p5, %p980_p0 }
  0x35   : > { %p983_p1 = pnand %p982_p3, %p976_p11 }
  0x37   : > { %986 = shalt.err (!%p983_p1)
}
  0x38   : > { %s987_s20 = scalar_lea.vmem %s1302_s8, 1024  ;;  %s1147_s21 = smov [#allocation5]  }
  0x39   : > { %p988_p4 = scmp.ne.s32.totalorder %s1302_s8, %s987_s20  ;;  %s992_s11 = sshll.u32 %s1147_s21, 4  ;;  %s993_s11 = int_to_ptr.vmem [resolvable:$false] %s992_s11 }
  0x3a   : > { %s994_s9 = scalar_lea.vmem %s993_s11, 2048  ;;  %p995_p10 = scmp.lt.s32.totalorder %s1302_s8, %s993_s11 }
  0x3b   : > { %p990_p9 = pnand %p988_p4, %p974_p6  ;;  %p996_p7 = scmp.lt.s32.totalorder %s994_s9, %s987_s20 }
  0x3d   : > { %p991_p12 = pneg %p990_p9  ;;  %p997_p13 = por %p996_p7, %p995_p10 }
  0x3f   : > { %p998_p5 = pnand %p997_p13, %p991_p12 }
  0x41   : > { %1001 = shalt.err (!%p998_p5)
}
  0x42   : > { %s1552_s22 = smov 64   ;;  %s1553_s24 = smov 4  }
  0x43   : > { %857 = dma.hbm_to_vmem [thread:$0]  (!%p1308_p2), %s1300_s7, 1024, %s1302_s8, %s1313_s23, %s1552_s22, %s1552_s22, %s1553_s24  }
  0x44   : > { %p221_p10 = scmp.lt.s32.totalorder %s1144_s6, 5  ;;  %p1566_p12 = scmp.ge.s32.totalorder %s1144_s6, 1 }
  0x45   : > { %s80_s20 = ssub.s32 %s1263_s14, %s1275_s16  ;;  %s87_s21 = sadd.s32 1, %s1120_s27 }
  0x46   : > { %p1347_p0 = pnand %p1566_p12, %p221_p10  ;;  %p85_p1 = scmp.eq.s32.totalorder %s80_s20, 0 }
  0x47   : > { %p94_p3 = scmp.ne.s32.totalorder %s1120_s27, %s1116_s26  ;;  %p100_p6 = scmp.ne.s32.totalorder %s1116_s26, %s1112_s25 }
  0x48   : > { %s198_s11 = sand.u32 1, %s1120_s27   ;;  %p1568_p11 = scmp.eq.s32.totalorder %s1144_s6, 0 }
  0x49   : > { %s1360_s13 = scalar_select %p85_p1, %s1120_s27, %s87_s21  }
  0x4a   : > { %p96_p4 = por %p94_p3, %p1568_p11  ;;  %p1366_p2 = por %p100_p6, %p1256_p8 }
  0x4b   : > { %s750_s8 = sshll.u32 %s198_s11, 6  ;;  %p1570_p9 = scmp.lt.s32.totalorder %s1144_s6, 4 }
  0x4c   : > { %s1569_s7 = scalar_select %p1366_p2, 1, 0 }
  0x4d   : > { %p1372_p7 = pnand %p1570_p9, %p96_p4  ;;  %p1572_p13 = pmov %p1570_p9 }
  0x4e   : > { %s847_s14 = scalar_select %p96_p4, [#allocation4], [#allocation11] }
  0x4f   : > { %s848_s25 = scalar_select %p96_p4, %s1140_s5, 0 }
  0x50   : > { %s1591_s14 = smov (!%p1572_p13, %s847_s14), [#allocation12]  ;;  %p1573_p5 = pmov %p1570_p9 }
  0x51   : > { %s202_s12 = scalar_lea.vmem [#allocation8], %s750_s8  ;;  %s1388_s1 = scalar_lea.sflag [#allocation9], %s198_s11 }
  0x52   : > { %s1593_s25 = smov (!%p1573_p5, %s848_s25), 0  ;;  %s213_s9 = sshll.u32 %s202_s12, 4  ;;  %s1381_s9 = int_to_ptr.vmem [resolvable:$true] %s213_s9 }
  0x53   : > { %s203_s16 = sld [smem:[%s1591_s14 + %s1593_s25]]  ;;  %p1004_p10 = pneg %p1372_p7 }
  0x54   : > { %s1007_s22 = scalar_lea.hbm %s1544_s2, 3072 }
  0x59   : > { %s780_s20 = sshll.u32 %s203_s16, 10 }
  0x5a   : > { %s1386_s24 = scalar_lea.hbm %s1544_s2, %s780_s20 }
  0x5b   : > { %s1002_s5 = scalar_lea.hbm %s1386_s24, 1024  ;;  %p1008_p3 = scmp.lt.u32.totalorder %s1386_s24, %s1544_s2 }
  0x5c   : > { %p1003_p8 = scmp.ne.s32.totalorder %s1386_s24, %s1002_s5  ;;  %p1009_p6 = scmp.lt.u32.totalorder %s1007_s22, %s1002_s5 }
  0x5d   : > { %p1011_p4 = scmp.lt.u32.totalorder %s1002_s5, %s1386_s24 }
  0x5e   : > { %p1005_p12 = pnand %p1004_p10, %p1003_p8  ;;  %p1010_p11 = por %p1009_p6, %p1008_p3 }
  0x60   : > { %p1006_p1 = pneg %p1005_p12  ;;  %p1012_p9 = por %p1011_p4, %p1010_p11 }
  0x62   : > { %p1013_p13 = pnand %p1012_p9, %p1006_p1 }
  0x64   : > { %1016 = shalt.err (!%p1013_p13)
}
  0x65   : > { %s1017_s11 = scalar_lea.vmem %s1381_s9, 1024  ;;  %s1150_s12 = smov [#allocation8]  }
  0x66   : > { %p1018_p5 = scmp.ne.s32.totalorder %s1381_s9, %s1017_s11  ;;  %s1022_s20 = sshll.u32 %s1150_s12, 4  ;;  %s1023_s20 = int_to_ptr.vmem [resolvable:$false] %s1022_s20 }
  0x67   : > { %s1024_s21 = scalar_lea.vmem %s1023_s20, 2048  ;;  %p1025_p2 = scmp.lt.s32.totalorder %s1381_s9, %s1023_s20 }
  0x68   : > { %p1020_p8 = pnand %p1018_p5, %p1004_p10  ;;  %p1026_p3 = scmp.lt.s32.totalorder %s1024_s21, %s1017_s11 }
  0x6a   : > { %p1021_p12 = pneg %p1020_p8  ;;  %p1027_p6 = por %p1026_p3, %p1025_p2 }
  0x6c   : > { %p1028_p11 = pnand %p1027_p6, %p1021_p12 }
  0x6e   : > { %1031 = shalt.err (!%p1028_p11)
}
  0x6f   : > { %s1574_s5 = smov 4   ;;  %s1575_s8 = smov 64  }
  0x70   : > { %862 = dma.hbm_to_vmem [thread:$0]  (!%p1372_p7), %s1386_s24, 1024, %s1381_s9, %s1388_s1, %s1575_s8, %s1575_s8, %s1574_s5  }
  0x71   : > { %225 = sbr.rel (%p1347_p0) target bundleno = 398 (0x18e), region = 32  ;;  %s1422_s14 = sand.u32 (!%p1347_p0), 1, %s1128_s29  }
  0x72   : > { %s754_s22 = sshll.u32 (!%p1347_p0), %s1422_s14, 6  ;;  %s228_s25 = scalar_lea.sflag (!%p1347_p0), [#allocation6], %s1422_s14 }
  0x73   : > { %s1426_s16 = scalar_lea.vmem (!%p1347_p0), [#allocation5], %s754_s22  ;;  %p1576_p2 = scmp.ne.s32.totalorder (!%p1347_p0), %s1561_s15, 0 }
  0x78   : > { %1099 = dma.done.wait (%p1576_p2), %s228_s25, 1024  }
  0x79   : > { %1101 = vsyncadd (%p1576_p2), %s228_s25, 4294966272  ;;  %s236_s1 = sand.u32 1, %s1116_s26   ;;  %p1577_p0 = scmp.ne.s32.totalorder %s1569_s7, 0 }
  0x7a   : > { %s755_s24 = sshll.u32 %s236_s1, 6  ;;  %s237_s10 = scalar_lea.sflag [#allocation9], %s236_s1 }
  0x7b   : > { %s1433_s23 = scalar_lea.vmem [#allocation8], %s755_s24 }
  0x7c   : > { %1103 = dma.done.wait (%p1577_p0), %s237_s10, 1024  }
  0x7d   : > { %1105 = vsyncadd (%p1577_p0), %s237_s10, 4294966272  ;;  %v946_v0 = vld [vmem:[%s1433_s23] sm:$0xff]   ;;  %v947_v1 = vld [vmem:[%s1433_s23 + $0x8] sm:$0xff]   ;;  %s273_s15 = sld [smem:[#allocation4 + %s1136_s30]]  ;;  %s756_s12 = sshll.u32 %s1422_s14, 7 }
  0x7e   : > { %798 = vmatprep.subr.bf16.mxu0 %v946_v0  ;;  %830 = vmatprep.subr.bf16.mxu1 %v946_v0  ;;  %v948_v2 = vld [vmem:[%s1433_s23 + $0x10] sm:$0xff]   ;;  %v949_v3 = vld [vmem:[%s1433_s23 + $0x18] sm:$0xff]   ;;  %v954_v4 = vld [vmem:[%s1426_s16] sm:$0xff]   ;;  %s1460_s20 = scalar_lea.vmem [#allocation10], %s756_s12  ;;  %s781_s21 = sshll.u32 %s1136_s30, 11 }
  0x7f   : > { %799 = vmatpush3.bf16.msra.mxu0 %v946_v0  ;;  %838 = vmatpush3.bf16.msra.mxu1 %v946_v0  ;;  %v955_v5 = vld [vmem:[%s1426_s16 + $0x20] sm:$0xff]   ;;  %v951_v7 = vld [vmem:[%s1433_s23 + $0x28] sm:$0xff]   ;;  %v952_v8 = vld [vmem:[%s1433_s23 + $0x30] sm:$0xff]   ;;  %s626_s5 = sshll.u32 %s1460_s20, 4  ;;  %s1477_s22 = scalar_lea.hbm %s1546_s4, %s781_s21  ;;  %s1479_s5 = int_to_ptr.vmem [resolvable:$true] %s626_s5 }
  0x80   : > { %800 = vmatprep.subr.bf16.mxu0 %v947_v1  ;;  %831 = vmatprep.subr.bf16.mxu1 %v947_v1  ;;  %v950_v6 = vld [vmem:[%s1433_s23 + $0x20] sm:$0xff]   ;;  %v953_v9 = vld [vmem:[%s1433_s23 + $0x38] sm:$0xff]   ;;  %v956_v10 = vld [vmem:[%s1426_s16 + $0x8] sm:$0xff]   ;;  %s612_s25 = scalar_lea.sflag [#allocation7], %s1422_s14  ;;  %p1578_p10 = scmp.ne.s32.totalorder %s1562_s18, 0 }
  0x81   : > { %814 = vmatprep.mubr.bf16.mxu0 %v954_v4  ;;  %822 = vmatprep.mubr.bf16.mxu1 %v955_v5  ;;  %v957_v11 = vld [vmem:[%s1426_s16 + $0x28] sm:$0xff]   ;;  %v958_v12 = vld [vmem:[%s1426_s16 + $0x10] sm:$0xff]   ;;  %v960_v14 = vld [vmem:[%s1426_s16 + $0x18] sm:$0xff]   ;;  %s1151_s1 = smov [#allocation10]  }
  0x82   : > { %v959_v13 = vld [vmem:[%s1426_s16 + $0x30] sm:$0xff]   ;;  %v961_v15 = vld [vmem:[%s1426_s16 + $0x38] sm:$0xff]   ;;  %s1032_s16 = scalar_lea.vmem %s1479_s5, 2048  ;;  %s1036_s24 = sshll.u32 %s1151_s1, 4  ;;  %s1037_s24 = int_to_ptr.vmem [resolvable:$false] %s1036_s24 }
  0x83   : > { %801 = vmatpush3.bf16.msra.mxu0 %v947_v1  ;;  %839 = vmatpush3.bf16.msra.mxu1 %v947_v1  ;;  %s279_s11 = scalar_lea.vmem %s1545_s3, %s273_s15  ;;  %p1033_p7 = scmp.ne.s32.totalorder %s1479_s5, %s1032_s16 }
  0x84   : > { %802 = vmatprep.subr.bf16.mxu0 %v948_v2  ;;  %832 = vmatprep.subr.bf16.mxu1 %v948_v2  ;;  %v757_v16 = vld [vmem:[%s279_s11] ss:$0 sm:$0xff]  ;;  %s1038_s10 = scalar_lea.vmem %s1037_s24, 4096  ;;  %p1039_p9 = scmp.lt.s32.totalorder %s1479_s5, %s1037_s24 }
  0x85   : > { %p1034_p1 = pnand %p1033_p7, %p1578_p10  ;;  %p1040_p13 = scmp.lt.s32.totalorder %s1038_s10, %s1032_s16 }
  0x87   : > { %803 = vmatpush3.bf16.msra.mxu0 %v948_v2  ;;  %840 = vmatpush3.bf16.msra.mxu1 %v948_v2  ;;  %p1035_p4 = pneg %p1034_p1  ;;  %p1041_p5 = por %p1040_p13, %p1039_p9 }
  0x88   : > { %804 = vmatprep.subr.bf16.mxu0 %v949_v3  ;;  %833 = vmatprep.subr.bf16.mxu1 %v949_v3 }
  0x89   : > { %p1042_p8 = pnand %p1041_p5, %p1035_p4 }
  0x8b   : > { %805 = vmatpush3.bf16.msra.mxu0 %v949_v3  ;;  %841 = vmatpush3.bf16.msra.mxu1 %v949_v3 }
  0x8c   : > { %806 = vmatprep.subr.bf16.mxu0 %v950_v6  ;;  %834 = vmatprep.subr.bf16.mxu1 %v950_v6 }
  0x8f   : > { %807 = vmatpush3.bf16.msra.mxu0 %v950_v6  ;;  %842 = vmatpush3.bf16.msra.mxu1 %v950_v6 }
  0x90   : > { %808 = vmatprep.subr.bf16.mxu0 %v951_v7  ;;  %835 = vmatprep.subr.bf16.mxu1 %v951_v7 }
  0x93   : > { %809 = vmatpush3.bf16.msra.mxu0 %v951_v7  ;;  %843 = vmatpush3.bf16.msra.mxu1 %v951_v7 }
  0x94   : > { %810 = vmatprep.subr.bf16.mxu0 %v952_v8  ;;  %836 = vmatprep.subr.bf16.mxu1 %v952_v8 }
  0x97   : > { %811 = vmatpush3.bf16.msra.mxu0 %v952_v8  ;;  %844 = vmatpush3.bf16.msra.mxu1 %v952_v8 }
  0x98   : > { %812 = vmatprep.subr.bf16.mxu0 %v953_v9  ;;  %837 = vmatprep.subr.bf16.mxu1 %v953_v9 }
  0x9b   : > { %813 = vmatpush3.bf16.msra.mxu0 %v953_v9  ;;  %845 = vmatpush3.bf16.msra.mxu1 %v953_v9 }
  0x9e   : > { %815 = vmatmul.mubr.bf16.vlgmr.msra.gmra.mrb[0].mxu0 %v956_v10  ;;  %823 = vmatmul.mubr.bf16.vlgmr.msra.gmra.mrb[0].mxu1 %v957_v11 }
  0x9f   : > { %818 = vmatprep.mubr.bf16.mxu0 %v958_v12  ;;  %826 = vmatprep.mubr.bf16.mxu1 %v959_v13 }
  0xa6   : > { %819 = vmatmul.mubr.bf16.gmra.mrb[4].mxu0 %v960_v14  ;;  %827 = vmatmul.mubr.bf16.gmra.mrb[4].mxu1 %v961_v15 }
 0x171   : > { %v816_v17 = vpop.f32.mrb[0].mxu0  ;;  %v824_v18 = vpop.f32.mrb[0].mxu1 }
 0x172   : > { %v546_v19 = vadd.f32 %v816_v17, %v757_v16  ;;  %v554_v20 = vadd.f32 %v824_v18, %v757_v16  ;;  %v481_v21 = vpop.f32.mrb[1].mxu0  ;;  %v513_v22 = vpop.f32.mrb[1].mxu1 }
 0x173   : > { %v544_v23 = vadd.f32 %v757_v16, %v481_v21  ;;  %v552_v24 = vadd.f32 %v757_v16, %v513_v22  ;;  %v817_v25 = vpop.f32.mrb[2].mxu0  ;;  %v825_v26 = vpop.f32.mrb[2].mxu1 }
 0x174   : > { %597 = vst [vmem:[%s1460_s20 + $0x10] sm:$0xff] %v546_v19  ;;  %605 = vst [vmem:[%s1460_s20 + $0x50] sm:$0xff] %v554_v20  ;;  %v547_v27 = vadd.f32 %v817_v25, %v757_v16  ;;  %v555_v28 = vadd.f32 %v825_v26, %v757_v16  ;;  %v484_v29 = vpop.f32.mrb[3].mxu0  ;;  %v516_v30 = vpop.f32.mrb[3].mxu1 }
 0x175   : > { %595 = vst [vmem:[%s1460_s20] sm:$0xff] %v544_v23  ;;  %603 = vst [vmem:[%s1460_s20 + $0x40] sm:$0xff] %v552_v24  ;;  %v545_v31 = vadd.f32 %v757_v16, %v484_v29  ;;  %v553_v32 = vadd.f32 %v757_v16, %v516_v30 }
 0x176   : > { %598 = vst [vmem:[%s1460_s20 + $0x18] sm:$0xff] %v547_v27  ;;  %606 = vst [vmem:[%s1460_s20 + $0x58] sm:$0xff] %v555_v28 }
 0x177   : > { %596 = vst [vmem:[%s1460_s20 + $0x8] sm:$0xff] %v545_v31  ;;  %604 = vst [vmem:[%s1460_s20 + $0x48] sm:$0xff] %v553_v32 }
 0x179   : > { %v820_v33 = vpop.f32.mrb[4].mxu0  ;;  %v828_v34 = vpop.f32.mrb[4].mxu1 }
 0x17a   : > { %v550_v35 = vadd.f32 %v820_v33, %v757_v16  ;;  %v558_v36 = vadd.f32 %v828_v34, %v757_v16  ;;  %v497_v37 = vpop.f32.mrb[5].mxu0  ;;  %v529_v38 = vpop.f32.mrb[5].mxu1 }
 0x17b   : > { %v548_v39 = vadd.f32 %v757_v16, %v497_v37  ;;  %v556_v40 = vadd.f32 %v757_v16, %v529_v38  ;;  %v821_v41 = vpop.f32.mrb[6].mxu0  ;;  %v829_v42 = vpop.f32.mrb[6].mxu1 }
 0x17c   : > { %601 = vst [vmem:[%s1460_s20 + $0x30] sm:$0xff] %v550_v35  ;;  %609 = vst [vmem:[%s1460_s20 + $0x70] sm:$0xff] %v558_v36  ;;  %v551_v43 = vadd.f32 %v821_v41, %v757_v16  ;;  %v559_v44 = vadd.f32 %v829_v42, %v757_v16  ;;  %v500_v45 = vpop.f32.mrb[7].mxu0  ;;  %v532_v46 = vpop.f32.mrb[7].mxu1 }
 0x17d   : > { %599 = vst [vmem:[%s1460_s20 + $0x20] sm:$0xff] %v548_v39  ;;  %607 = vst [vmem:[%s1460_s20 + $0x60] sm:$0xff] %v556_v40  ;;  %v549_v47 = vadd.f32 %v757_v16, %v500_v45  ;;  %v557_v48 = vadd.f32 %v757_v16, %v532_v46 }
 0x17e   : > { %602 = vst [vmem:[%s1460_s20 + $0x38] sm:$0xff] %v551_v43  ;;  %610 = vst [vmem:[%s1460_s20 + $0x78] sm:$0xff] %v559_v44 }
 0x17f   : > { %600 = vst [vmem:[%s1460_s20 + $0x28] sm:$0xff] %v549_v47  ;;  %608 = vst [vmem:[%s1460_s20 + $0x68] sm:$0xff] %v557_v48 }
 0x180   : > { %1045 = shalt.err (!%p1042_p8)
}
 0x181   : > { %s1046_s23 = scalar_lea.hbm %s1477_s22, 2048  ;;  %s1050_s9 = scalar_lea.hbm %s1546_s4, 8192 }
 0x182   : > { %p1047_p12 = scmp.ne.s32.totalorder %s1477_s22, %s1046_s23  ;;  %p1051_p11 = scmp.lt.u32.totalorder %s1477_s22, %s1546_s4 }
 0x183   : > { %p1052_p2 = scmp.lt.u32.totalorder %s1050_s9, %s1046_s23  ;;  %p1054_p7 = scmp.lt.u32.totalorder %s1046_s23, %s1477_s22 }
 0x184   : > { %p1048_p3 = pnand %p1047_p12, %p1578_p10 }
 0x185   : > { %p1053_p0 = por %p1052_p2, %p1051_p11 }
 0x186   : > { %p1049_p6 = pneg %p1048_p3 }
 0x187   : > { %p1055_p1 = por %p1054_p7, %p1053_p0 }
 0x189   : > { %p1056_p4 = pnand %p1055_p1, %p1049_p6 }
 0x18b   : > { %1059 = shalt.err (!%p1056_p4)
}
 0x18c   : > { %s1152_s20 = smov 128   ;;  %s1153_s21 = smov 8  }
 0x18d   : > { %852 = dma.vmem_to_hbm [thread:$0]  (%p1578_p10), %s1479_s5, 2048, %s1477_s22, %s612_s25, %s1152_s20, %s1152_s20, %s1153_s21  }
 0x18e PF: > { %p868_p9 = scmp.ge.s32.totalorder %s1144_s6, 2  ;;  %s641_s30 = sand.u32 1, %s1124_s28  }
 0x18f   : > { %p1579_p13 = scmp.ne.s32.totalorder %s1563_s19, 0  ;;  %s642_s8 = scalar_lea.sflag [#allocation7], %s641_s30 }
 0x191   : > { %p864_p5 = pnand %p868_p9, %p1579_p13 }
 0x193   : > { %1107 = dma.done.wait (!%p864_p5), %s642_s8, 2048  }
 0x194   : > { %1109 = vsyncadd (!%p864_p5), %s642_s8, 4294965248  ;;  %s27_s6 = sadd.s32 1, %s1144_s6   ;;  %s1580_s30 = sld [smem:[#allocation17_spill]] }
 0x195   : > { %p24_p8 = scmp.ge.s32.totalorder %s27_s6, 6   ;;  %s1581_s5 = sld [smem:[#allocation18_spill]] }
 0x196   : > { %s1582_s25 = smov %s1116_s26  ;;  %s1583_s26 = smov %s1120_s27 }
 0x197   : > { %s1584_s27 = smov %s1360_s13  ;;  %s1585_s28 = smov %s1128_s29 }
 0x198   : > { %s1586_s29 = smov %s1132_s0  ;;  %s1587_s0 = smov %s1278_s17 }
 0x199   :  { %26 = sbr.rel (!%p24_p8) target bundleno = 22 (0x16), region = 99 }
 0x1a0   :  { %647 = vsyncpa [#allocation6], 1 }
 0x1a1   :  { %649 = vsyncpa [#allocation6 + $0x1], 1 }
 0x1a2   :  { %650 = vsyncpa [#allocation9], 1 }
 0x1a3   :  { %652 = vsyncpa [#allocation9 + $0x1], 1 }
 0x1a4   :  { %653 = vsyncpa [#allocation7], 1 }
 0x1a5   :  { %655 = vsyncpa [#allocation7 + $0x1], 1 }

</bundles_post_ra>
